<compile_context>
chip_gen: v7x
topology: tpu7x:2x2x1
jax: 0.10.0
libtpu: 0.0.40
codegen_flags: <defaults>
</compile_context>

<pallas_src>
import jax
import jax.numpy as jnp
from jax.experimental import pallas as pl
from jax.experimental.pallas import tpu as pltpu

EPS = 1e-5
LANE = 128      # vreg lane width
SUBLANE = 8     # f32 sublane count


def _round_up(x, m):
    return (x + m - 1) // m * m


def _vmem_budget_bytes(frac=0.72, default_cap=64 << 20):
    """~frac of this generation's physical VMEM (v5e/v6e 128 MiB, v7x 64 MiB)."""
    try:
        cap = int(pltpu.get_tpu_info().vmem_capacity_bytes)
    except Exception:
        cap = default_cap   # conservative (v7x per-core VMEM)
    return int(frac * cap)


# ----------------------------- fused Pallas kernel ---------------------------

def _make_fused_mlp_kernel(n_hidden, d_out):
    """Kernel over one batch tile: chained bf16 dots + f32 bias [+ ReLU]."""
    def kernel(*refs):
        x_ref = refs[0]
        o_ref = refs[-1]
        h = x_ref[...]                                   # f32 (tile_b, d_in)
        idx = 1
        for _ in range(n_hidden):
            w_ref, b_ref = refs[idx], refs[idx + 1]
            idx += 2
            y = jnp.dot(h.astype(jnp.bfloat16), w_ref[...],
                        preferred_element_type=jnp.float32)
            h = jnp.maximum(y + b_ref[...], 0.0)         # folded-BN bias + ReLU (f32)
        w_ref, b_ref = refs[idx], refs[idx + 1]          # final Linear
        y = jnp.dot(h.astype(jnp.bfloat16), w_ref[...],
                    preferred_element_type=jnp.float32) + b_ref[...]
        # Store only the real (unpadded) output lanes to HBM.
        o_ref[...] = y[:, :d_out].astype(o_ref.dtype)
    return kernel


# ------------------------------ host wrapper ---------------------------------

def mlp_forward_pallas(folded_params, x, *, max_tile_b=1024):
    """folded_params from fold_and_pad_params(); x: (B, d_in) f32 -> (B, d_out)."""
    layers = folded_params["layers"]          # [(w_pad_bf16, b_pad_f32), ...]
    d_in = folded_params["d_in"]
    d_out = folded_params["d_out"]
    n_hidden = len(layers) - 1

    B = x.shape[0]
    assert x.shape[1] == d_in == layers[0][0].shape[0]

    # Batch tile: a multiple of 8 sublanes; >= 2 tiles for small batches so the
    # "parallel" grid axis can shard across v7x's two TensorCores; 1024-row
    # tiles for large batches to amortize per-grid-step overhead.
    B8 = _round_up(B, SUBLANE)
    if B8 <= max_tile_b:
        tile_b = _round_up((B8 + 1) // 2, SUBLANE)
    else:
        tile_b = max_tile_b
    B_pad = _round_up(B, tile_b)

    # Rows-only padding; no feature-lane padding of the HBM input.
    x_f32 = x.astype(jnp.float32)
    if B_pad != B:
        x_f32 = jnp.pad(x_f32, ((0, B_pad - B), (0, 0)))

    kernel = _make_fused_mlp_kernel(n_hidden, d_out)
    flat_args = [x_f32]
    for (w, b) in layers:
        flat_args.extend([w, b])

    # VMEM accounting: single-buffered bf16 weights + f32 biases resident,
    # double-buffered x/out tiles, f32/bf16 intermediate activations.
    weight_bytes = sum(w.size * w.dtype.itemsize + b.size * b.dtype.itemsize
                       for (w, b) in layers)
    io_bytes = 2 * 4 * tile_b * (d_in + d_out)
    max_wide = max(w.shape[1] for (w, _) in layers)
    act_bytes = 3 * 4 * tile_b * max_wide
    vmem_needed = weight_bytes + io_bytes + act_bytes + (4 << 20)
    vmem_budget = _vmem_budget_bytes()
    if vmem_needed > vmem_budget:
        # TODO(synk): streaming-weights fallback (pl.ANY + make_async_copy).
        raise ValueError(
            f"resident folded weights ({weight_bytes} B) + working set "
            f"({vmem_needed} B) exceed the VMEM budget ({vmem_budget} B); "
            "streaming fallback not implemented")
    vmem_limit = min(max(vmem_needed, 32 << 20), vmem_budget)

    compiler_params = pltpu.CompilerParams(
        dimension_semantics=("parallel",),
        vmem_limit_bytes=vmem_limit,
    )

    def _call(weight_pipeline_mode):
        in_specs = [pl.BlockSpec((tile_b, d_in), lambda i: (i, 0))]
        for (w, b) in layers:
            in_specs.append(pl.BlockSpec(w.shape, lambda i: (0, 0),
                                         pipeline_mode=weight_pipeline_mode))
            in_specs.append(pl.BlockSpec(b.shape, lambda i: (0, 0),
                                         pipeline_mode=weight_pipeline_mode))
        return pl.pallas_call(
            kernel,
            out_shape=jax.ShapeDtypeStruct((B_pad, d_out), jnp.float32),
            grid=(B_pad // tile_b,),
            in_specs=in_specs,
            out_specs=pl.BlockSpec((tile_b, d_out), lambda i: (i, 0)),
            compiler_params=compiler_params,
        )(*flat_args)

    try:
        # Constant index_map -> single-buffer the resident weights/biases so
        # the pipeliner does not double their VMEM footprint.
        out = _call(pl.Buffered(1))
    except Exception:
        out = _call(None)   # default double-buffering (still DMA'd only once)

    return out[:B]


# ------------------------- parameter construction ---------------------------

def init_mlp_params(key, d_in, d_layers, d_out=1):
    """Torch-like shapes/init.  Linear weight stored transposed: (fan_in, fan_out).
    BatchNorm running stats are randomized (non-trivial) to exercise the fold."""
    params = {"hidden": [], "out": None}
    cur = d_in
    for d in d_layers:
        key, kw, kb, kg, kbe, km, kv = jax.random.split(key, 7)
        bound = 1.0 / jnp.sqrt(cur)
        w = jax.random.uniform(kw, (cur, d), jnp.float32, -bound, bound)
        b = jax.random.uniform(kb, (1, d), jnp.float32, -bound, bound)
        gamma = 1.0 + 0.1 * jax.random.normal(kg, (1, d), jnp.float32)
        beta = 0.1 * jax.random.normal(kbe, (1, d), jnp.float32)
        mean = 0.1 * jax.random.normal(km, (1, d), jnp.float32)
        var = jax.random.uniform(kv, (1, d), jnp.float32, 0.5, 1.5)
        params["hidden"].append((w, b, gamma, beta, mean, var))
        cur = d
    key, kw, kb = jax.random.split(key, 3)
    bound = 1.0 / jnp.sqrt(cur)
    w = jax.random.uniform(kw, (cur, d_out), jnp.float32, -bound, bound)
    b = jax.random.uniform(kb, (1, d_out), jnp.float32, -bound, bound)
    params["out"] = (w, b)
    return params


def fold_and_pad_params(params, d_in, d_out):
    """Fold eval-mode BN into each hidden Linear; pad only VMEM-internal dims
    (hidden widths / final weight's out dim) to 128 lanes; store weights bf16.
    The HBM-facing input (d_in) and output (d_out) widths stay unpadded."""
    layers = []
    for (w, b, gamma, beta, mean, var) in params["hidden"]:
        scale = gamma * jax.lax.rsqrt(var + EPS)        # (1, d)
        layers.append((w * scale, (b - mean) * scale + beta))
    layers.append(params["out"])

    padded = []
    prev_pad = d_in                      # first fan_in = real (unpadded) d_in
    for (w, b) in layers:
        di, do = w.shape
        do_pad = _round_up(do, LANE)     # lane-dense internal width
        di_pad = prev_pad                # matches the activation width in VMEM
        w_p = jnp.zeros((di_pad, do_pad), jnp.bfloat16).at[:di, :do].set(
            w.astype(jnp.bfloat16))
        b_p = jnp.zeros((1, do_pad), jnp.float32).at[:, :do].set(b)
        padded.append((w_p, b_p))
        prev_pad = do_pad
    return {"layers": padded, "d_in": d_in, "d_out": d_out}


# ------------------------------- reference -----------------------------------

def mlp_forward_ref(params, x):
    """Plain-JAX eval-mode reference (unfolded, unpadded, f32) for verification."""
    h = x
    for (w, b, gamma, beta, mean, var) in params["hidden"]:
        y = h @ w + b
        y = (y - mean) * jax.lax.rsqrt(var + EPS) * gamma + beta
        h = jnp.maximum(y, 0.0)
    w, b = params["out"]
    return h @ w + b


# ----------------------------------- main ------------------------------------

if __name__ == "__main__":
    d_in = 16
    d_layers = (32, 32)
    d_out = 1
    batch = 16

    key = jax.random.PRNGKey(0)
    key_params, key_x = jax.random.split(key)
    params = init_mlp_params(key_params, d_in, d_layers, d_out)
    folded = fold_and_pad_params(params, d_in, d_out)
    x = jax.random.normal(key_x, (batch, d_in), jnp.float32)

    out = mlp_forward_pallas(folded, x)
    out = jax.block_until_ready(out)

    ref = mlp_forward_ref(params, x)
    assert out.shape == (batch, d_out), out.shape
    err = float(jnp.max(jnp.abs(out - ref)))
    # bf16 weight storage: tolerance loosened vs. the f32 reference.
    assert jnp.allclose(out, ref, atol=5e-2, rtol=5e-2), f"mismatch vs ref: {err}"

    print("KERNEL_OK")
</pallas_src>

<mosaic_0001>
module attributes {stable_mosaic.version = 11 : i64} {
  func.func @kernel(%arg0: i32, %arg1: memref<8x16xf32, #tpu.memory_space<vmem>>, %arg2: memref<16x128xbf16, #tpu.memory_space<vmem>>, %arg3: memref<1x128xf32, #tpu.memory_space<vmem>>, %arg4: memref<128x128xbf16, #tpu.memory_space<vmem>>, %arg5: memref<1x128xf32, #tpu.memory_space<vmem>>, %arg6: memref<128x128xbf16, #tpu.memory_space<vmem>>, %arg7: memref<1x128xf32, #tpu.memory_space<vmem>>, %arg8: memref<8x1xf32, #tpu.memory_space<vmem>>) attributes {dimension_semantics = [#tpu.dimension_semantics<parallel>], iteration_bounds = array<i64: 2>, scalar_prefetch = 0 : i64, scratch_operands = 0 : i64, tpu.core_type = #tpu.core_type<tc>, window_params = [{transform_indices = @transform_0, window_bounds = array<i64: 8, 16>}, {pipeline_mode = #tpu.pipeline_mode<synchronous>, transform_indices = @transform_1, window_bounds = array<i64: 16, 128>}, {pipeline_mode = #tpu.pipeline_mode<synchronous>, transform_indices = @transform_2, window_bounds = array<i64: 1, 128>}, {pipeline_mode = #tpu.pipeline_mode<synchronous>, transform_indices = @transform_3, window_bounds = array<i64: 128, 128>}, {pipeline_mode = #tpu.pipeline_mode<synchronous>, transform_indices = @transform_4, window_bounds = array<i64: 1, 128>}, {pipeline_mode = #tpu.pipeline_mode<synchronous>, transform_indices = @transform_5, window_bounds = array<i64: 128, 128>}, {pipeline_mode = #tpu.pipeline_mode<synchronous>, transform_indices = @transform_6, window_bounds = array<i64: 1, 128>}, {transform_indices = @transform_7, window_bounds = array<i64: 8, 1>}]} {
    %c0 = arith.constant 0 : index
    %c0_0 = arith.constant 0 : index
    %0 = vector.load %arg1[%c0, %c0_0] : memref<8x16xf32, #tpu.memory_space<vmem>>, vector<8x16xf32>
    %1 = arith.truncf %0 : vector<8x16xf32> to vector<8x16xbf16>
    %c0_1 = arith.constant 0 : index
    %c0_2 = arith.constant 0 : index
    %2 = vector.load %arg2[%c0_1, %c0_2] : memref<16x128xbf16, #tpu.memory_space<vmem>>, vector<16x128xbf16>
    %cst = arith.constant dense<0.000000e+00> : vector<8x128xf32>
    %3 = tpu.matmul %1, %2, %cst {dimension_numbers = #tpu.dot_dimension_numbers<[1], [0], [0], [1], [0, 0, 1, 1], [], []>} : vector<8x16xbf16>, vector<16x128xbf16>, vector<8x128xf32> -> vector<8x128xf32>
    %c0_3 = arith.constant 0 : index
    %c0_4 = arith.constant 0 : index
    %4 = vector.load %arg3[%c0_3, %c0_4] : memref<1x128xf32, #tpu.memory_space<vmem>>, vector<1x128xf32>
    %5 = vector.broadcast %4 : vector<1x128xf32> to vector<8x128xf32>
    %6 = arith.addf %3, %5 : vector<8x128xf32>
    %cst_5 = arith.constant 0.000000e+00 : f32
    %7 = vector.broadcast %cst_5 : f32 to vector<8x128xf32>
    %8 = arith.maximumf %6, %7 : vector<8x128xf32>
    %9 = arith.truncf %8 : vector<8x128xf32> to vector<8x128xbf16>
    %c0_6 = arith.constant 0 : index
    %c0_7 = arith.constant 0 : index
    %10 = vector.load %arg4[%c0_6, %c0_7] : memref<128x128xbf16, #tpu.memory_space<vmem>>, vector<128x128xbf16>
    %cst_8 = arith.constant dense<0.000000e+00> : vector<8x128xf32>
    %11 = tpu.matmul %9, %10, %cst_8 {dimension_numbers = #tpu.dot_dimension_numbers<[1], [0], [0], [1], [0, 0, 1, 1], [], []>} : vector<8x128xbf16>, vector<128x128xbf16>, vector<8x128xf32> -> vector<8x128xf32>
    %c0_9 = arith.constant 0 : index
    %c0_10 = arith.constant 0 : index
    %12 = vector.load %arg5[%c0_9, %c0_10] : memref<1x128xf32, #tpu.memory_space<vmem>>, vector<1x128xf32>
    %13 = vector.broadcast %12 : vector<1x128xf32> to vector<8x128xf32>
    %14 = arith.addf %11, %13 : vector<8x128xf32>
    %cst_11 = arith.constant 0.000000e+00 : f32
    %15 = vector.broadcast %cst_11 : f32 to vector<8x128xf32>
    %16 = arith.maximumf %14, %15 : vector<8x128xf32>
    %17 = arith.truncf %16 : vector<8x128xf32> to vector<8x128xbf16>
    %c0_12 = arith.constant 0 : index
    %c0_13 = arith.constant 0 : index
    %18 = vector.load %arg6[%c0_12, %c0_13] : memref<128x128xbf16, #tpu.memory_space<vmem>>, vector<128x128xbf16>
    %cst_14 = arith.constant dense<0.000000e+00> : vector<8x128xf32>
    %19 = tpu.matmul %17, %18, %cst_14 {dimension_numbers = #tpu.dot_dimension_numbers<[1], [0], [0], [1], [0, 0, 1, 1], [], []>} : vector<8x128xbf16>, vector<128x128xbf16>, vector<8x128xf32> -> vector<8x128xf32>
    %c0_15 = arith.constant 0 : index
    %c0_16 = arith.constant 0 : index
    %20 = vector.load %arg7[%c0_15, %c0_16] : memref<1x128xf32, #tpu.memory_space<vmem>>, vector<1x128xf32>
    %21 = vector.broadcast %20 : vector<1x128xf32> to vector<8x128xf32>
    %22 = arith.addf %19, %21 : vector<8x128xf32>
    %23 = vector.extract_strided_slice %22 {offsets = [0, 0], sizes = [8, 1], strides = [1, 1]} : vector<8x128xf32> to vector<8x1xf32>
    %c0_17 = arith.constant 0 : index
    %c0_18 = arith.constant 0 : index
    %24 = vector.load %arg8[%c0_17, %c0_18] : memref<8x1xf32, #tpu.memory_space<vmem>>, vector<8x1xf32>
    tpu.vector_store %arg8[%c0_17, %c0_18], %23 {strides = array<i32>} : memref<8x1xf32, #tpu.memory_space<vmem>>, vector<8x1xf32>,
    return
  }
  func.func @transform_0(%arg0: i32) -> (i32, i32) {
    %c0_i32 = arith.constant 0 : i32
    %c0_i32_0 = arith.constant 0 : i32
    return %arg0, %c0_i32 : i32, i32
  }
  func.func @transform_1(%arg0: i32) -> (i32, i32) {
    %c0_i32 = arith.constant 0 : i32
    %c0_i32_0 = arith.constant 0 : i32
    %c0_i32_1 = arith.constant 0 : i32
    return %c0_i32, %c0_i32_0 : i32, i32
  }
  func.func @transform_2(%arg0: i32) -> (i32, i32) {
    %c0_i32 = arith.constant 0 : i32
    %c0_i32_0 = arith.constant 0 : i32
    %c0_i32_1 = arith.constant 0 : i32
    return %c0_i32, %c0_i32_0 : i32, i32
  }
  func.func @transform_3(%arg0: i32) -> (i32, i32) {
    %c0_i32 = arith.constant 0 : i32
    %c0_i32_0 = arith.constant 0 : i32
    %c0_i32_1 = arith.constant 0 : i32
    return %c0_i32, %c0_i32_0 : i32, i32
  }
  func.func @transform_4(%arg0: i32) -> (i32, i32) {
    %c0_i32 = arith.constant 0 : i32
    %c0_i32_0 = arith.constant 0 : i32
    %c0_i32_1 = arith.constant 0 : i32
    return %c0_i32, %c0_i32_0 : i32, i32
  }
  func.func @transform_5(%arg0: i32) -> (i32, i32) {
    %c0_i32 = arith.constant 0 : i32
    %c0_i32_0 = arith.constant 0 : i32
    %c0_i32_1 = arith.constant 0 : i32
    return %c0_i32, %c0_i32_0 : i32, i32
  }
  func.func @transform_6(%arg0: i32) -> (i32, i32) {
    %c0_i32 = arith.constant 0 : i32
    %c0_i32_0 = arith.constant 0 : i32
    %c0_i32_1 = arith.constant 0 : i32
    return %c0_i32, %c0_i32_0 : i32, i32
  }
  func.func @transform_7(%arg0: i32) -> (i32, i32) {
    %c0_i32 = arith.constant 0 : i32
    %c0_i32_0 = arith.constant 0 : i32
    return %arg0, %c0_i32 : i32, i32
  }
}

module attributes {stable_mosaic.version = 11 : i64} {
  func.func @kernel(%arg0: i32, %arg1: memref<8x16xf32, #tpu.memory_space<vmem>>, %arg2: memref<16x128xbf16, #tpu.memory_space<vmem>>, %arg3: memref<1x128xf32, #tpu.memory_space<vmem>>, %arg4: memref<128x128xbf16, #tpu.memory_space<vmem>>, %arg5: memref<1x128xf32, #tpu.memory_space<vmem>>, %arg6: memref<128x128xbf16, #tpu.memory_space<vmem>>, %arg7: memref<1x128xf32, #tpu.memory_space<vmem>>, %arg8: memref<8x1xf32, #tpu.memory_space<vmem>>) attributes {dimension_semantics = [#tpu.dimension_semantics<parallel>], iteration_bounds = array<i64: 2>, scalar_prefetch = 0 : i64, scratch_operands = 0 : i64, tpu.core_type = #tpu.core_type<tc>, window_params = [{transform_indices = @transform_0, window_bounds = array<i64: 8, 16>}, {pipeline_mode = #tpu.pipeline_mode<synchronous>, transform_indices = @transform_1, window_bounds = array<i64: 16, 128>}, {pipeline_mode = #tpu.pipeline_mode<synchronous>, transform_indices = @transform_2, window_bounds = array<i64: 1, 128>}, {pipeline_mode = #tpu.pipeline_mode<synchronous>, transform_indices = @transform_3, window_bounds = array<i64: 128, 128>}, {pipeline_mode = #tpu.pipeline_mode<synchronous>, transform_indices = @transform_4, window_bounds = array<i64: 1, 128>}, {pipeline_mode = #tpu.pipeline_mode<synchronous>, transform_indices = @transform_5, window_bounds = array<i64: 128, 128>}, {pipeline_mode = #tpu.pipeline_mode<synchronous>, transform_indices = @transform_6, window_bounds = array<i64: 1, 128>}, {transform_indices = @transform_7, window_bounds = array<i64: 8, 1>}]} {
    %c0 = arith.constant 0 : index
    %c0_0 = arith.constant 0 : index
    %0 = vector.load %arg1[%c0, %c0_0] : memref<8x16xf32, #tpu.memory_space<vmem>>, vector<8x16xf32>
    %1 = arith.truncf %0 : vector<8x16xf32> to vector<8x16xbf16>
    %c0_1 = arith.constant 0 : index
    %c0_2 = arith.constant 0 : index
    %2 = vector.load %arg2[%c0_1, %c0_2] : memref<16x128xbf16, #tpu.memory_space<vmem>>, vector<16x128xbf16>
    %cst = arith.constant dense<0.000000e+00> : vector<8x128xf32>
    %3 = tpu.matmul %1, %2, %cst {dimension_numbers = #tpu.dot_dimension_numbers<[1], [0], [0], [1], [0, 0, 1, 1], [], []>} : vector<8x16xbf16>, vector<16x128xbf16>, vector<8x128xf32> -> vector<8x128xf32>
    %c0_3 = arith.constant 0 : index
    %c0_4 = arith.constant 0 : index
    %4 = vector.load %arg3[%c0_3, %c0_4] : memref<1x128xf32, #tpu.memory_space<vmem>>, vector<1x128xf32>
    %5 = vector.broadcast %4 : vector<1x128xf32> to vector<8x128xf32>
    %6 = arith.addf %3, %5 : vector<8x128xf32>
    %cst_5 = arith.constant 0.000000e+00 : f32
    %7 = vector.broadcast %cst_5 : f32 to vector<8x128xf32>
    %8 = arith.maximumf %6, %7 : vector<8x128xf32>
    %9 = arith.truncf %8 : vector<8x128xf32> to vector<8x128xbf16>
    %c0_6 = arith.constant 0 : index
    %c0_7 = arith.constant 0 : index
    %10 = vector.load %arg4[%c0_6, %c0_7] : memref<128x128xbf16, #tpu.memory_space<vmem>>, vector<128x128xbf16>
    %cst_8 = arith.constant dense<0.000000e+00> : vector<8x128xf32>
    %11 = tpu.matmul %9, %10, %cst_8 {dimension_numbers = #tpu.dot_dimension_numbers<[1], [0], [0], [1], [0, 0, 1, 1], [], []>} : vector<8x128xbf16>, vector<128x128xbf16>, vector<8x128xf32> -> vector<8x128xf32>
    %c0_9 = arith.constant 0 : index
    %c0_10 = arith.constant 0 : index
    %12 = vector.load %arg5[%c0_9, %c0_10] : memref<1x128xf32, #tpu.memory_space<vmem>>, vector<1x128xf32>
    %13 = vector.broadcast %12 : vector<1x128xf32> to vector<8x128xf32>
    %14 = arith.addf %11, %13 : vector<8x128xf32>
    %cst_11 = arith.constant 0.000000e+00 : f32
    %15 = vector.broadcast %cst_11 : f32 to vector<8x128xf32>
    %16 = arith.maximumf %14, %15 : vector<8x128xf32>
    %17 = arith.truncf %16 : vector<8x128xf32> to vector<8x128xbf16>
    %c0_12 = arith.constant 0 : index
    %c0_13 = arith.constant 0 : index
    %18 = vector.load %arg6[%c0_12, %c0_13] : memref<128x128xbf16, #tpu.memory_space<vmem>>, vector<128x128xbf16>
    %cst_14 = arith.constant dense<0.000000e+00> : vector<8x128xf32>
    %19 = tpu.matmul %17, %18, %cst_14 {dimension_numbers = #tpu.dot_dimension_numbers<[1], [0], [0], [1], [0, 0, 1, 1], [], []>} : vector<8x128xbf16>, vector<128x128xbf16>, vector<8x128xf32> -> vector<8x128xf32>
    %c0_15 = arith.constant 0 : index
    %c0_16 = arith.constant 0 : index
    %20 = vector.load %arg7[%c0_15, %c0_16] : memref<1x128xf32, #tpu.memory_space<vmem>>, vector<1x128xf32>
    %21 = vector.broadcast %20 : vector<1x128xf32> to vector<8x128xf32>
    %22 = arith.addf %19, %21 : vector<8x128xf32>
    %23 = vector.extract_strided_slice %22 {offsets = [0, 0], sizes = [8, 1], strides = [1, 1]} : vector<8x128xf32> to vector<8x1xf32>
    %c0_17 = arith.constant 0 : index
    %c0_18 = arith.constant 0 : index
    %24 = vector.load %arg8[%c0_17, %c0_18] : memref<8x1xf32, #tpu.memory_space<vmem>>, vector<8x1xf32>
    tpu.vector_store %arg8[%c0_17, %c0_18], %23 {strides = array<i32>} : memref<8x1xf32, #tpu.memory_space<vmem>>, vector<8x1xf32>,
    return
  }
  func.func @transform_0(%arg0: i32) -> (i32, i32) {
    %c0_i32 = arith.constant 0 : i32
    %c0_i32_0 = arith.constant 0 : i32
    return %arg0, %c0_i32 : i32, i32
  }
  func.func @transform_1(%arg0: i32) -> (i32, i32) {
    %c0_i32 = arith.constant 0 : i32
    %c0_i32_0 = arith.constant 0 : i32
    %c0_i32_1 = arith.constant 0 : i32
    return %c0_i32, %c0_i32_0 : i32, i32
  }
  func.func @transform_2(%arg0: i32) -> (i32, i32) {
    %c0_i32 = arith.constant 0 : i32
    %c0_i32_0 = arith.constant 0 : i32
    %c0_i32_1 = arith.constant 0 : i32
    return %c0_i32, %c0_i32_0 : i32, i32
  }
  func.func @transform_3(%arg0: i32) -> (i32, i32) {
    %c0_i32 = arith.constant 0 : i32
    %c0_i32_0 = arith.constant 0 : i32
    %c0_i32_1 = arith.constant 0 : i32
    return %c0_i32, %c0_i32_0 : i32, i32
  }
  func.func @transform_4(%arg0: i32) -> (i32, i32) {
    %c0_i32 = arith.constant 0 : i32
    %c0_i32_0 = arith.constant 0 : i32
    %c0_i32_1 = arith.constant 0 : i32
    return %c0_i32, %c0_i32_0 : i32, i32
  }
  func.func @transform_5(%arg0: i32) -> (i32, i32) {
    %c0_i32 = arith.constant 0 : i32
    %c0_i32_0 = arith.constant 0 : i32
    %c0_i32_1 = arith.constant 0 : i32
    return %c0_i32, %c0_i32_0 : i32, i32
  }
  func.func @transform_6(%arg0: i32) -> (i32, i32) {
    %c0_i32 = arith.constant 0 : i32
    %c0_i32_0 = arith.constant 0 : i32
    %c0_i32_1 = arith.constant 0 : i32
    return %c0_i32, %c0_i32_0 : i32, i32
  }
  func.func @transform_7(%arg0: i32) -> (i32, i32) {
    %c0_i32 = arith.constant 0 : i32
    %c0_i32_0 = arith.constant 0 : i32
    return %arg0, %c0_i32 : i32, i32
  }
}

</mosaic_0001>

<bundles_post_ra>
// kernel: tpu_custom_call.1
= control target key start
LH: loop header
LB: loop body
LE: loop exit
PB: predicated region body
PF: predicated region fallthrough
CT: control target
= control target key end

     0   :  { %12 = vsyncpa [#allocation3], 0  ;;  %s1364_s0 = inlined_call_operand.hbm [shape: f32[16,16], index: 0, kind: input, shape index: {}]   ;;  %s1365_s1 = inlined_call_operand.hbm [shape: bf16[16,128], index: 1, kind: input, shape index: {}]   ;;  %s1366_s2 = inlined_call_operand.vmem [shape: f32[1,128], index: 2, kind: input, shape index: {}]   ;;  %s1367_s3 = inlined_call_operand.hbm [shape: bf16[128,128], index: 3, kind: input, shape index: {}]   ;;  %s1368_s4 = inlined_call_operand.vmem [shape: f32[1,128], index: 4, kind: input, shape index: {}]   ;;  %s1369_s5 = inlined_call_operand.hbm [shape: bf16[128,128], index: 5, kind: input, shape index: {}]   ;;  %s1370_s6 = inlined_call_operand.vmem [shape: f32[1,128], index: 6, kind: input, shape index: {}]   ;;  %s1371_s7 = inlined_call_operand.vmem [shape: f32[16,1], index: 7, kind: output, shape index: {}]  }
   0x1   :  { %14 = vsyncpa [#allocation3 + $0x1], 0 }
   0x2   :  { %15 = vsyncpa [#allocation5], 0 }
   0x3   :  { %16 = vsyncpa [#allocation8], 0  ;;  %s1122_s24 = smov 0   ;;  %s1124_s25 = smov 0  }
   0x4   :  { %s1126_s26 = smov 0   ;;  %s1128_s27 = smov 0  }
   0x5 LB: > { %s1141_s28 = sadd.s32 4294967295, %s1072_s27   ;;  %p42_p0 = scmp.ne.s32.totalorder %s1064_s25, %s1060_s24  ;;  %s1072_s27 = sphi %s1128_s27, %s1389_s27   ;;  %s1068_s26 = sphi %s1126_s26, %s1388_s26   ;;  %s1064_s25 = sphi %s1124_s25, %s1387_s25   ;;  %s1060_s24 = sphi %s1122_s24, %s1386_s24  }
   0x6   : > { %p1372_p1 = scmp.eq.s32.totalorder %s1141_s28, 0  ;;  %p723_p2 = scmp.ge.s32.totalorder %s1072_s27, 1 }
   0x7   : > { %p205_p3 = scmp.lt.s32.totalorder %s1072_s27, 3  ;;  %s1074_s8 = smov [#allocation4]  }
   0x8   : > { %p1149_p4 = por %p1372_p1, %p42_p0  ;;  %s217_s9 = sshll.u32 %s1074_s8, 4  ;;  %s1157_s9 = int_to_ptr.vmem [resolvable:$true] %s217_s9 }
   0x9   : > { %p1153_p5 = pnand %p723_p2, %p205_p3  ;;  %s1075_s11 = smov [#allocation6]  }
   0xa   : > { %s1375_s29 = scalar_select %p1149_p4, 1, 0 }
   0xb   : > { %s1376_s30 = scalar_select %p1153_p5, 1, 0 }
   0xc   : > { %p839_p6 = pneg %p1153_p5  ;;  %s233_s12 = sshll.u32 %s1075_s11, 4  ;;  %s1167_s12 = int_to_ptr.vmem [resolvable:$true] %s233_s12 }
   0xd   : > { %s1076_s13 = smov [#allocation7]   ;;  %s916_s17 = scalar_lea.hbm %s1365_s1, 128 }
   0xe   : > { %p1163_p7 = pnand %p839_p6, %p1372_p1  ;;  %s1169_s14 = sshll.u32 %s1076_s13, 4  ;;  %s250_s14 = int_to_ptr.vmem [resolvable:$true] %s1169_s14 }
   0xf   : > { %p917_p8 = scmp.ne.s32.totalorder %s1365_s1, %s916_s17  ;;  %p923_p12 = scmp.lt.u32.totalorder %s916_s17, %s1365_s1 }
  0x10   : > { %p1179_p9 = pneg %p1163_p7 }
  0x12   : > { %p919_p10 = pnand %p1179_p9, %p917_p8 }
  0x14   : > { %p920_p11 = pneg %p919_p10 }
  0x16   : > { %p925_p13 = pnand %p923_p12, %p920_p11 }
  0x18   : > { %928 = shalt.err (!%p925_p13)
}
  0x19   : > { %s929_s23 = scalar_lea.vmem %s1157_s9, 128  ;;  %p937_p6 = scmp.lt.s32.totalorder %s1157_s9, %s1157_s9 }
  0x1a   : > { %p930_p0 = scmp.ne.s32.totalorder %s1157_s9, %s929_s23  ;;  %p938_p1 = scmp.lt.s32.totalorder %s929_s23, %s929_s23 }
  0x1c   : > { %p932_p2 = pnand %p930_p0, %p1179_p9  ;;  %p939_p8 = por %p938_p1, %p937_p6 }
  0x1e   : > { %p933_p3 = pneg %p932_p2 }
  0x20   : > { %p940_p10 = pnand %p939_p8, %p933_p3 }
  0x22   : > { %943 = shalt.err (!%p940_p10)
}
  0x23   : > { %s1077_s24 = smov 64   ;;  %s1078_s8 = smov 4  }
  0x24   : > { %842 = dma.hbm_to_vmem [thread:$0]  (!%p1163_p7), %s1365_s1, 128, %s1157_s9, [#allocation5], %s1077_s24, %s1077_s24, %s1078_s8  }
  0x25   : > { %s944_s17 = scalar_lea.hbm %s1367_s3, 1024 }
  0x26   : > { %p945_p1 = scmp.ne.s32.totalorder %s1367_s3, %s944_s17  ;;  %p951_p13 = scmp.lt.u32.totalorder %s944_s17, %s1367_s3 }
  0x28   : > { %p947_p11 = pnand %p945_p1, %p1179_p9 }
  0x2a   : > { %p948_p12 = pneg %p947_p11 }
  0x2c   : > { %p953_p0 = pnand %p951_p13, %p948_p12 }
  0x2e   : > { %956 = shalt.err (!%p953_p0)
}
  0x2f   : > { %s957_s9 = scalar_lea.vmem %s1167_s12, 1024  ;;  %p965_p8 = scmp.lt.s32.totalorder %s1167_s12, %s1167_s12 }
  0x30   : > { %p958_p2 = scmp.ne.s32.totalorder %s1167_s12, %s957_s9  ;;  %p966_p10 = scmp.lt.s32.totalorder %s957_s9, %s957_s9 }
  0x32   : > { %p960_p3 = pnand %p958_p2, %p1179_p9  ;;  %p967_p1 = por %p966_p10, %p965_p8 }
  0x34   : > { %p961_p6 = pneg %p960_p3 }
  0x36   : > { %p968_p11 = pnand %p967_p1, %p961_p6 }
  0x38   : > { %971 = shalt.err (!%p968_p11)
}
  0x39   : > { %845 = dma.hbm_to_vmem [thread:$0]  (!%p1163_p7), %s1367_s3, 1024, %s1167_s12, [#allocation5], %s1077_s24, %s1077_s24, %s1078_s8  }
  0x3a   : > { %s972_s16 = scalar_lea.hbm %s1369_s5, 1024 }
  0x3b   : > { %p973_p12 = scmp.ne.s32.totalorder %s1369_s5, %s972_s16  ;;  %p979_p2 = scmp.lt.u32.totalorder %s972_s16, %s1369_s5 }
  0x3d   : > { %p975_p13 = pnand %p973_p12, %p1179_p9 }
  0x3f   : > { %p976_p0 = pneg %p975_p13 }
  0x41   : > { %p981_p3 = pnand %p979_p2, %p976_p0 }
  0x43   : > { %984 = shalt.err (!%p981_p3)
}
  0x44   : > { %s985_s22 = scalar_lea.vmem %s250_s14, 1024  ;;  %p993_p1 = scmp.lt.s32.totalorder %s250_s14, %s250_s14 }
  0x45   : > { %p986_p6 = scmp.ne.s32.totalorder %s250_s14, %s985_s22  ;;  %p994_p11 = scmp.lt.s32.totalorder %s985_s22, %s985_s22 }
  0x47   : > { %p988_p8 = pnand %p986_p6, %p1179_p9  ;;  %p995_p4 = por %p994_p11, %p993_p1 }
  0x49   : > { %p989_p10 = pneg %p988_p8 }
  0x4b   : > { %p996_p5 = pnand %p995_p4, %p989_p10 }
  0x4d   : > { %999 = shalt.err (!%p996_p5)
}
  0x4e   : > { %848 = dma.hbm_to_vmem [thread:$0]  (!%p1163_p7), %s1369_s5, 1024, %s250_s14, [#allocation8], %s1077_s24, %s1077_s24, %s1078_s8  }
  0x4f   : > { %s1252_s20 = sadd.s32 1, %s1072_s27   ;;  %s29_s23 = sadd.s32 1, %s1068_s26 }
  0x50   : > { %s26_s10 = ssub.s32 %s1072_s27, %s1252_s20  ;;  %p36_p5 = scmp.ne.s32.totalorder %s1068_s26, %s1064_s25 }
  0x51   : > { %p27_p4 = scmp.eq.s32.totalorder %s26_s10, 0  ;;  %p37_p9 = scmp.eq.s32.totalorder %s1072_s27, 0 }
  0x52   : > { %p856_p12 = scmp.lt.s32.totalorder %s1072_s27, 2  ;;  %s266_s13 = sand.u32 1, %s1068_s26  }
  0x53   : > { %s1262_s11 = scalar_select %p27_p4, %s1068_s26, %s29_s23  }
  0x54   : > { %p38_p13 = por %p37_p9, %p36_p5  ;;  %s728_s15 = sshll.u32 %s266_s13, 3 }
  0x55   : > { %s729_s16 = sshll.u32 %s1072_s27, 7  ;;  %s270_s14 = scalar_lea.vmem [#allocation2], %s728_s15 }
  0x56   : > { %s1269_s19 = scalar_lea.hbm %s1364_s0, %s729_s16  ;;  %s277_s24 = sshll.u32 %s270_s14, 4  ;;  %s1271_s24 = int_to_ptr.vmem [resolvable:$true] %s277_s24 }
  0x57   : > { %p1273_p7 = pnand %p856_p12, %p38_p13  ;;  %s267_s27 = scalar_lea.sflag [#allocation3], %s266_s13 }
  0x58   : > { %s1000_s21 = scalar_lea.hbm %s1269_s19, 128  ;;  %s1005_s9 = scalar_lea.hbm %s1364_s0, 256 }
  0x59   : > { %p1001_p0 = scmp.ne.s32.totalorder %s1269_s19, %s1000_s21  ;;  %p1002_p2 = pneg %p1273_p7 }
  0x5a   : > { %p1006_p8 = scmp.lt.u32.totalorder %s1269_s19, %s1364_s0  ;;  %p1007_p10 = scmp.lt.u32.totalorder %s1005_s9, %s1000_s21 }
  0x5b   : > { %p1003_p3 = pnand %p1002_p2, %p1001_p0  ;;  %p1009_p11 = scmp.lt.u32.totalorder %s1000_s21, %s1269_s19 }
  0x5c   : > { %p1008_p1 = por %p1007_p10, %p1006_p8 }
  0x5d   : > { %p1004_p6 = pneg %p1003_p3 }
  0x5e   : > { %p1010_p4 = por %p1009_p11, %p1008_p1 }
  0x60   : > { %p1011_p5 = pnand %p1010_p4, %p1004_p6 }
  0x62   : > { %1014 = shalt.err (!%p1011_p5)
}
  0x63   : > { %s1015_s13 = scalar_lea.vmem %s1271_s24, 128  ;;  %s1079_s15 = smov [#allocation2]  }
  0x64   : > { %p1016_p9 = scmp.ne.s32.totalorder %s1271_s24, %s1015_s13  ;;  %s1020_s16 = sshll.u32 %s1079_s15, 4  ;;  %s1021_s16 = int_to_ptr.vmem [resolvable:$false] %s1020_s16 }
  0x65   : > { %s1022_s17 = scalar_lea.vmem %s1021_s16, 256  ;;  %p1023_p0 = scmp.lt.s32.totalorder %s1271_s24, %s1021_s16 }
  0x66   : > { %p1018_p12 = pnand %p1016_p9, %p1002_p2  ;;  %p1024_p3 = scmp.lt.s32.totalorder %s1022_s17, %s1015_s13 }
  0x68   : > { %p1019_p13 = pneg %p1018_p12  ;;  %p1025_p8 = por %p1024_p3, %p1023_p0 }
  0x6a   : > { %p1026_p10 = pnand %p1025_p8, %p1019_p13 }
  0x6c   : > { %1029 = shalt.err (!%p1026_p10)
}
  0x6d   : > { %852 = dma.hbm_to_vmem [thread:$0]  (!%p1273_p7), %s1269_s19, 128, %s1271_s24, %s267_s27  }
  0x6e   : > { %p1380_p6 = scmp.ne.s32.totalorder %s1376_s30, 0 }
  0x6f   : > { %s288_s18 = sand.u32 (!%p1380_p6), 1, %s1064_s25   ;;  %p1381_p2 = scmp.ne.s32.totalorder (!%p1380_p6), %s1375_s29, 0 }
  0x70   : > { %286 = sbr.rel (%p1380_p6) target bundleno = 783 (0x30f), region = 48  ;;  %s731_s14 = sshll.u32 (!%p1380_p6), %s288_s18, 3 }
  0x71   : > { %s289_s21 = scalar_lea.sflag (!%p1380_p6), [#allocation3], %s288_s18  ;;  %s292_s22 = scalar_lea.vmem (!%p1380_p6), [#allocation2], %s731_s14 }
  0x77   : > { %1047 = dma.done.wait (%p1381_p2), %s289_s21, 128  }
  0x78   : > { %1049 = vsyncadd (%p1381_p2), %s289_s21, 4294967168  ;;  %p1382_p1 = scmp.eq.s32.totalorder %s1141_s28, 0 }
  0x7a   : > { %1051 = dma.done.wait (%p1382_p1), [#allocation5], 1152   ;;  %p1383_p11 = pmov %p1382_p1 }
  0x7b   : > { %p1384_p7 = pmov %p1382_p1 }
  0x7c   : > { %1053 = vsyncadd (%p1383_p11), [#allocation5], 4294966144 }
  0x7d   : > { %1055 = dma.done.wait (%p1384_p7), [#allocation8], 1024   ;;  %p1385_p4 = pmov %p1382_p1 }
  0x7e   : > { %v1080_v0 = vmov 0.0   ;;  %vm1081_vm0 = vmmov 0   ;;  %v899_v1 = vld [vmem:[#allocation4] sm:$0xff]   ;;  %v339_v2 = vld [vmem:[%s292_s22] sm:$0xff]  ;;  %vm356_vm1 = vcmask 130048   ;;  %v900_v4 = vld [vmem:[#allocation6] sm:$0xff]  }
  0x7f   : > { %1057 = vsyncadd (%p1385_p4), [#allocation8], 4294966272  ;;  %779 = vmatprep.subr.bf16.mxu0 %v1080_v0  ;;  %781 = vmatprep.mubr.msk.bf16.mxu0 %vm1081_vm0, %v1080_v0  ;;  %v340_v3 = vpack.c.bf16 %v339_v2, %v339_v2  ;;  %v901_v5 = vld [vmem:[#allocation6 + $0x8] sm:$0xff]   ;;  %v902_v6 = vld [vmem:[#allocation6 + $0x10] sm:$0xff]   ;;  %p334_p5 = scmp.lt.s32.totalorder %s1141_s28, 1  ;;  %vm626_vm2 = vcmask 7168  }
  0x80   : > { %785 = vmatprep.subr.bf16.mxu1 %v1080_v0  ;;  %801 = vmatprep.mubr.msk.bf16.mxu1 %vm1081_vm0, %v1080_v0  ;;  %v903_v7 = vld [vmem:[#allocation6 + $0x18] sm:$0xff]   ;;  %v904_v8 = vld [vmem:[#allocation6 + $0x20] sm:$0xff]   ;;  %v905_v9 = vld [vmem:[#allocation6 + $0x28] sm:$0xff]  }
  0x81   : > { %780 = vmatpush3.bf16.msra.mxu0 %v899_v1  ;;  %786 = vmatpush3.bf16.msra.mxu1 %v900_v4  ;;  %v906_v10 = vld [vmem:[#allocation6 + $0x30] sm:$0xff]   ;;  %v907_v11 = vld [vmem:[#allocation6 + $0x38] sm:$0xff]   ;;  %v908_v12 = vld [vmem:[#allocation7] sm:$0xff]   ;;  %s1391_s28 = smov (!%p334_p5, %s1141_s28), 1 }
  0x82   : > { %805 = vmatprep.subr.bf16.mxu0 %v1080_v0  ;;  %787 = vmatprep.subr.bf16.mxu1 %v1080_v0  ;;  %v909_v13 = vld [vmem:[#allocation7 + $0x8] sm:$0xff]   ;;  %v910_v14 = vld [vmem:[#allocation7 + $0x10] sm:$0xff]   ;;  %v911_v15 = vld [vmem:[#allocation7 + $0x18] sm:$0xff]   ;;  %s735_s8 = sshll.u32 %s1391_s28, 3 }
  0x83   : > { %v912_v16 = vld [vmem:[#allocation7 + $0x20] sm:$0xff]   ;;  %v913_v17 = vld [vmem:[#allocation7 + $0x28] sm:$0xff]   ;;  %v914_v26 = vld [vmem:[#allocation7 + $0x30] sm:$0xff]   ;;  %s337_s23 = scalar_lea.vmem %s1371_s7, %s735_s8 }
  0x84   : > { %782 = vmatmul.mubr.msk.bf16.vlgmr.msra.gmra.mrb[0].mxu0 %vm356_vm1, %v340_v3  ;;  %v736_v18 = vld [vmem:[%s1366_s2] ss:$0 sm:$0xff]  ;;  %v915_v27 = vld [vmem:[#allocation7 + $0x38] sm:$0xff]  }
  0x85   : > { %821 = vmatprep.mubr.msk.bf16.mxu0 %vm1081_vm0, %v1080_v0  ;;  %788 = vmatpush3.bf16.msra.mxu1 %v901_v5  ;;  %v739_v28 = vld [vmem:[%s1368_s4] ss:$0 sm:$0xff] }
  0x86   : > { %789 = vmatprep.subr.bf16.mxu1 %v1080_v0  ;;  %806 = vmatpush3.bf16.msra.mxu0 %v908_v12  ;;  %v748_v36 = vld [vmem:[%s1370_s6] ss:$0 sm:$0xff] }
  0x87   : > { %807 = vmatprep.subr.bf16.mxu0 %v1080_v0 }
  0x89   : > { %790 = vmatpush3.bf16.msra.mxu1 %v902_v6 }
  0x8a   : > { %791 = vmatprep.subr.bf16.mxu1 %v1080_v0  ;;  %808 = vmatpush3.bf16.msra.mxu0 %v909_v13 }
  0x8b   : > { %809 = vmatprep.subr.bf16.mxu0 %v1080_v0 }
  0x8d   : > { %792 = vmatpush3.bf16.msra.mxu1 %v903_v7 }
  0x8e   : > { %793 = vmatprep.subr.bf16.mxu1 %v1080_v0  ;;  %810 = vmatpush3.bf16.msra.mxu0 %v910_v14 }
  0x8f   : > { %811 = vmatprep.subr.bf16.mxu0 %v1080_v0 }
  0x91   : > { %794 = vmatpush3.bf16.msra.mxu1 %v904_v8 }
  0x92   : > { %795 = vmatprep.subr.bf16.mxu1 %v1080_v0  ;;  %812 = vmatpush3.bf16.msra.mxu0 %v911_v15 }
  0x93   : > { %813 = vmatprep.subr.bf16.mxu0 %v1080_v0 }
  0x95   : > { %796 = vmatpush3.bf16.msra.mxu1 %v905_v9 }
  0x96   : > { %797 = vmatprep.subr.bf16.mxu1 %v1080_v0  ;;  %814 = vmatpush3.bf16.msra.mxu0 %v912_v16 }
  0x97   : > { %815 = vmatprep.subr.bf16.mxu0 %v1080_v0 }
  0x99   : > { %798 = vmatpush3.bf16.msra.mxu1 %v906_v10 }
  0x9a   : > { %799 = vmatprep.subr.bf16.mxu1 %v1080_v0  ;;  %816 = vmatpush3.bf16.msra.mxu0 %v913_v17 }
  0x9b   : > { %817 = vmatprep.subr.bf16.mxu0 %v1080_v0 }
  0x9d   : > { %800 = vmatpush3.bf16.msra.mxu1 %v907_v11 }
  0x9e   : > { %818 = vmatpush3.bf16.msra.mxu0 %v914_v26 }
  0x9f   : > { %819 = vmatprep.subr.bf16.mxu0 %v1080_v0 }
  0xa2   : > { %820 = vmatpush3.bf16.msra.mxu0 %v915_v27 }
 0x157   : > { %v394_v19 = vpop.f32.mrb[0].mxu0 }
 0x158   : > { %v395_v20 = vadd.f32 %v736_v18, %v394_v19  ;;  %v783_v21 = vpop.f32.mrb[1].mxu0 }
 0x159   : > { %v397_v22 = vpop.f32.mrb[2].mxu0 }
 0x15a   : > { %v400_v23 = vmax.f32 %v395_v20, 0.0  ;;  %v784_v24 = vpop.f32.mrb[3].mxu0 }
 0x15c   : > { %v401_v25 = vpack.c.bf16 %v400_v23, %v400_v23 }
 0x15e   : > { %802 = vmatmul.mubr.bf16.vlgmr.msra.gmra.mrb[0].mxu1 %v401_v25 }
 0x231   : > { %v507_v29 = vpop.f32.mrb[0].mxu1 }
 0x232   : > { %v508_v30 = vadd.f32 %v739_v28, %v507_v29  ;;  %v803_v31 = vpop.f32.mrb[1].mxu1 }
 0x233   : > { %v510_v32 = vpop.f32.mrb[2].mxu1 }
 0x234   : > { %v513_v33 = vmax.f32 %v508_v30, 0.0  ;;  %v804_v34 = vpop.f32.mrb[3].mxu1 }
 0x236   : > { %v514_v35 = vpack.c.bf16 %v513_v33, %v513_v33 }
 0x238   : > { %822 = vmatmul.mubr.bf16.vlgmr.msra.gmra.mrb[4].mxu0 %v514_v35 }
 0x30b   : > { %v620_v37 = vpop.f32.mrb[4].mxu0 }
 0x30c   : > { %v621_v38 = vadd.f32 %v748_v36, %v620_v37  ;;  %v823_v39 = vpop.f32.mrb[5].mxu0 }
 0x30d   : > { %v623_v40 = vpop.f32.mrb[6].mxu0 }
 0x30e   : > { %627 = vst.msk [vmem:[%s337_s23] sm:$0xff] %vm626_vm2, %v621_v38  ;;  %v824_v41 = vpop.f32.mrb[7].mxu0 }
 0x30f PF: > { %p19_p9 = scmp.ge.s32.totalorder %s1252_s20, 4   ;;  %s1386_s24 = smov %s1064_s25 }
 0x310   : > { %s1387_s25 = smov %s1068_s26  ;;  %s1388_s26 = smov %s1262_s11 }
 0x311   : > { %s1389_s27 = smov %s1252_s20  ;;  %21 = sbr.rel (!%p19_p9) target bundleno = 5 (0x5), region = 100 }
 0x318   :  { %647 = vsyncpa [#allocation3], 1 }
 0x319   :  { %649 = vsyncpa [#allocation3 + $0x1], 1 }
 0x31a   :  { %650 = vsyncpa [#allocation5], 1 }
 0x31b   :  { %651 = vsyncpa [#allocation8], 1 }

// kernel: tpu_custom_call.1
= control target key start
LH: loop header
LB: loop body
LE: loop exit
PB: predicated region body
PF: predicated region fallthrough
CT: control target
= control target key end

     0   :  { %12 = vsyncpa [#allocation3], 0  ;;  %s1364_s0 = inlined_call_operand.hbm [shape: f32[16,16], index: 0, kind: input, shape index: {}]   ;;  %s1365_s1 = inlined_call_operand.hbm [shape: bf16[16,128], index: 1, kind: input, shape index: {}]   ;;  %s1366_s2 = inlined_call_operand.vmem [shape: f32[1,128], index: 2, kind: input, shape index: {}]   ;;  %s1367_s3 = inlined_call_operand.hbm [shape: bf16[128,128], index: 3, kind: input, shape index: {}]   ;;  %s1368_s4 = inlined_call_operand.vmem [shape: f32[1,128], index: 4, kind: input, shape index: {}]   ;;  %s1369_s5 = inlined_call_operand.hbm [shape: bf16[128,128], index: 5, kind: input, shape index: {}]   ;;  %s1370_s6 = inlined_call_operand.vmem [shape: f32[1,128], index: 6, kind: input, shape index: {}]   ;;  %s1371_s7 = inlined_call_operand.vmem [shape: f32[16,1], index: 7, kind: output, shape index: {}]  }
   0x1   :  { %14 = vsyncpa [#allocation3 + $0x1], 0 }
   0x2   :  { %15 = vsyncpa [#allocation5], 0 }
   0x3   :  { %16 = vsyncpa [#allocation8], 0  ;;  %s1122_s24 = smov 0   ;;  %s1124_s25 = smov 0  }
   0x4   :  { %s1126_s26 = smov 0   ;;  %s1128_s27 = smov 0  }
   0x5 LB: > { %s1141_s28 = sadd.s32 4294967295, %s1072_s27   ;;  %p42_p0 = scmp.ne.s32.totalorder %s1064_s25, %s1060_s24  ;;  %s1072_s27 = sphi %s1128_s27, %s1389_s27   ;;  %s1068_s26 = sphi %s1126_s26, %s1388_s26   ;;  %s1064_s25 = sphi %s1124_s25, %s1387_s25   ;;  %s1060_s24 = sphi %s1122_s24, %s1386_s24  }
   0x6   : > { %p1372_p1 = scmp.eq.s32.totalorder %s1141_s28, 0  ;;  %p723_p2 = scmp.ge.s32.totalorder %s1072_s27, 1 }
   0x7   : > { %p205_p3 = scmp.lt.s32.totalorder %s1072_s27, 3  ;;  %s1074_s8 = smov [#allocation4]  }
   0x8   : > { %p1149_p4 = por %p1372_p1, %p42_p0  ;;  %s217_s9 = sshll.u32 %s1074_s8, 4  ;;  %s1157_s9 = int_to_ptr.vmem [resolvable:$true] %s217_s9 }
   0x9   : > { %p1153_p5 = pnand %p723_p2, %p205_p3  ;;  %s1075_s11 = smov [#allocation6]  }
   0xa   : > { %s1375_s29 = scalar_select %p1149_p4, 1, 0 }
   0xb   : > { %s1376_s30 = scalar_select %p1153_p5, 1, 0 }
   0xc   : > { %p839_p6 = pneg %p1153_p5  ;;  %s233_s12 = sshll.u32 %s1075_s11, 4  ;;  %s1167_s12 = int_to_ptr.vmem [resolvable:$true] %s233_s12 }
   0xd   : > { %s1076_s13 = smov [#allocation7]   ;;  %s916_s17 = scalar_lea.hbm %s1365_s1, 128 }
   0xe   : > { %p1163_p7 = pnand %p839_p6, %p1372_p1  ;;  %s1169_s14 = sshll.u32 %s1076_s13, 4  ;;  %s250_s14 = int_to_ptr.vmem [resolvable:$true] %s1169_s14 }
   0xf   : > { %p917_p8 = scmp.ne.s32.totalorder %s1365_s1, %s916_s17  ;;  %p923_p12 = scmp.lt.u32.totalorder %s916_s17, %s1365_s1 }
  0x10   : > { %p1179_p9 = pneg %p1163_p7 }
  0x12   : > { %p919_p10 = pnand %p1179_p9, %p917_p8 }
  0x14   : > { %p920_p11 = pneg %p919_p10 }
  0x16   : > { %p925_p13 = pnand %p923_p12, %p920_p11 }
  0x18   : > { %928 = shalt.err (!%p925_p13)
}
  0x19   : > { %s929_s23 = scalar_lea.vmem %s1157_s9, 128  ;;  %p937_p6 = scmp.lt.s32.totalorder %s1157_s9, %s1157_s9 }
  0x1a   : > { %p930_p0 = scmp.ne.s32.totalorder %s1157_s9, %s929_s23  ;;  %p938_p1 = scmp.lt.s32.totalorder %s929_s23, %s929_s23 }
  0x1c   : > { %p932_p2 = pnand %p930_p0, %p1179_p9  ;;  %p939_p8 = por %p938_p1, %p937_p6 }
  0x1e   : > { %p933_p3 = pneg %p932_p2 }
  0x20   : > { %p940_p10 = pnand %p939_p8, %p933_p3 }
  0x22   : > { %943 = shalt.err (!%p940_p10)
}
  0x23   : > { %s1077_s24 = smov 64   ;;  %s1078_s8 = smov 4  }
  0x24   : > { %842 = dma.hbm_to_vmem [thread:$0]  (!%p1163_p7), %s1365_s1, 128, %s1157_s9, [#allocation5], %s1077_s24, %s1077_s24, %s1078_s8  }
  0x25   : > { %s944_s17 = scalar_lea.hbm %s1367_s3, 1024 }
  0x26   : > { %p945_p1 = scmp.ne.s32.totalorder %s1367_s3, %s944_s17  ;;  %p951_p13 = scmp.lt.u32.totalorder %s944_s17, %s1367_s3 }
  0x28   : > { %p947_p11 = pnand %p945_p1, %p1179_p9 }
  0x2a   : > { %p948_p12 = pneg %p947_p11 }
  0x2c   : > { %p953_p0 = pnand %p951_p13, %p948_p12 }
  0x2e   : > { %956 = shalt.err (!%p953_p0)
}
  0x2f   : > { %s957_s9 = scalar_lea.vmem %s1167_s12, 1024  ;;  %p965_p8 = scmp.lt.s32.totalorder %s1167_s12, %s1167_s12 }
  0x30   : > { %p958_p2 = scmp.ne.s32.totalorder %s1167_s12, %s957_s9  ;;  %p966_p10 = scmp.lt.s32.totalorder %s957_s9, %s957_s9 }
  0x32   : > { %p960_p3 = pnand %p958_p2, %p1179_p9  ;;  %p967_p1 = por %p966_p10, %p965_p8 }
  0x34   : > { %p961_p6 = pneg %p960_p3 }
  0x36   : > { %p968_p11 = pnand %p967_p1, %p961_p6 }
  0x38   : > { %971 = shalt.err (!%p968_p11)
}
  0x39   : > { %845 = dma.hbm_to_vmem [thread:$0]  (!%p1163_p7), %s1367_s3, 1024, %s1167_s12, [#allocation5], %s1077_s24, %s1077_s24, %s1078_s8  }
  0x3a   : > { %s972_s16 = scalar_lea.hbm %s1369_s5, 1024 }
  0x3b   : > { %p973_p12 = scmp.ne.s32.totalorder %s1369_s5, %s972_s16  ;;  %p979_p2 = scmp.lt.u32.totalorder %s972_s16, %s1369_s5 }
  0x3d   : > { %p975_p13 = pnand %p973_p12, %p1179_p9 }
  0x3f   : > { %p976_p0 = pneg %p975_p13 }
  0x41   : > { %p981_p3 = pnand %p979_p2, %p976_p0 }
  0x43   : > { %984 = shalt.err (!%p981_p3)
}
  0x44   : > { %s985_s22 = scalar_lea.vmem %s250_s14, 1024  ;;  %p993_p1 = scmp.lt.s32.totalorder %s250_s14, %s250_s14 }
  0x45   : > { %p986_p6 = scmp.ne.s32.totalorder %s250_s14, %s985_s22  ;;  %p994_p11 = scmp.lt.s32.totalorder %s985_s22, %s985_s22 }
  0x47   : > { %p988_p8 = pnand %p986_p6, %p1179_p9  ;;  %p995_p4 = por %p994_p11, %p993_p1 }
  0x49   : > { %p989_p10 = pneg %p988_p8 }
  0x4b   : > { %p996_p5 = pnand %p995_p4, %p989_p10 }
  0x4d   : > { %999 = shalt.err (!%p996_p5)
}
  0x4e   : > { %848 = dma.hbm_to_vmem [thread:$0]  (!%p1163_p7), %s1369_s5, 1024, %s250_s14, [#allocation8], %s1077_s24, %s1077_s24, %s1078_s8  }
  0x4f   : > { %s1252_s20 = sadd.s32 1, %s1072_s27   ;;  %s29_s23 = sadd.s32 1, %s1068_s26 }
  0x50   : > { %s26_s10 = ssub.s32 %s1072_s27, %s1252_s20  ;;  %p36_p5 = scmp.ne.s32.totalorder %s1068_s26, %s1064_s25 }
  0x51   : > { %p27_p4 = scmp.eq.s32.totalorder %s26_s10, 0  ;;  %p37_p9 = scmp.eq.s32.totalorder %s1072_s27, 0 }
  0x52   : > { %p856_p12 = scmp.lt.s32.totalorder %s1072_s27, 2  ;;  %s266_s13 = sand.u32 1, %s1068_s26  }
  0x53   : > { %s1262_s11 = scalar_select %p27_p4, %s1068_s26, %s29_s23  }
  0x54   : > { %p38_p13 = por %p37_p9, %p36_p5  ;;  %s728_s15 = sshll.u32 %s266_s13, 3 }
  0x55   : > { %s729_s16 = sshll.u32 %s1072_s27, 7  ;;  %s270_s14 = scalar_lea.vmem [#allocation2], %s728_s15 }
  0x56   : > { %s1269_s19 = scalar_lea.hbm %s1364_s0, %s729_s16  ;;  %s277_s24 = sshll.u32 %s270_s14, 4  ;;  %s1271_s24 = int_to_ptr.vmem [resolvable:$true] %s277_s24 }
  0x57   : > { %p1273_p7 = pnand %p856_p12, %p38_p13  ;;  %s267_s27 = scalar_lea.sflag [#allocation3], %s266_s13 }
  0x58   : > { %s1000_s21 = scalar_lea.hbm %s1269_s19, 128  ;;  %s1005_s9 = scalar_lea.hbm %s1364_s0, 256 }
  0x59   : > { %p1001_p0 = scmp.ne.s32.totalorder %s1269_s19, %s1000_s21  ;;  %p1002_p2 = pneg %p1273_p7 }
  0x5a   : > { %p1006_p8 = scmp.lt.u32.totalorder %s1269_s19, %s1364_s0  ;;  %p1007_p10 = scmp.lt.u32.totalorder %s1005_s9, %s1000_s21 }
  0x5b   : > { %p1003_p3 = pnand %p1002_p2, %p1001_p0  ;;  %p1009_p11 = scmp.lt.u32.totalorder %s1000_s21, %s1269_s19 }
  0x5c   : > { %p1008_p1 = por %p1007_p10, %p1006_p8 }
  0x5d   : > { %p1004_p6 = pneg %p1003_p3 }
  0x5e   : > { %p1010_p4 = por %p1009_p11, %p1008_p1 }
  0x60   : > { %p1011_p5 = pnand %p1010_p4, %p1004_p6 }
  0x62   : > { %1014 = shalt.err (!%p1011_p5)
}
  0x63   : > { %s1015_s13 = scalar_lea.vmem %s1271_s24, 128  ;;  %s1079_s15 = smov [#allocation2]  }
  0x64   : > { %p1016_p9 = scmp.ne.s32.totalorder %s1271_s24, %s1015_s13  ;;  %s1020_s16 = sshll.u32 %s1079_s15, 4  ;;  %s1021_s16 = int_to_ptr.vmem [resolvable:$false] %s1020_s16 }
  0x65   : > { %s1022_s17 = scalar_lea.vmem %s1021_s16, 256  ;;  %p1023_p0 = scmp.lt.s32.totalorder %s1271_s24, %s1021_s16 }
  0x66   : > { %p1018_p12 = pnand %p1016_p9, %p1002_p2  ;;  %p1024_p3 = scmp.lt.s32.totalorder %s1022_s17, %s1015_s13 }
  0x68   : > { %p1019_p13 = pneg %p1018_p12  ;;  %p1025_p8 = por %p1024_p3, %p1023_p0 }
  0x6a   : > { %p1026_p10 = pnand %p1025_p8, %p1019_p13 }
  0x6c   : > { %1029 = shalt.err (!%p1026_p10)
}
  0x6d   : > { %852 = dma.hbm_to_vmem [thread:$0]  (!%p1273_p7), %s1269_s19, 128, %s1271_s24, %s267_s27  }
  0x6e   : > { %p1380_p6 = scmp.ne.s32.totalorder %s1376_s30, 0 }
  0x6f   : > { %s288_s18 = sand.u32 (!%p1380_p6), 1, %s1064_s25   ;;  %p1381_p2 = scmp.ne.s32.totalorder (!%p1380_p6), %s1375_s29, 0 }
  0x70   : > { %286 = sbr.rel (%p1380_p6) target bundleno = 783 (0x30f), region = 48  ;;  %s731_s14 = sshll.u32 (!%p1380_p6), %s288_s18, 3 }
  0x71   : > { %s289_s21 = scalar_lea.sflag (!%p1380_p6), [#allocation3], %s288_s18  ;;  %s292_s22 = scalar_lea.vmem (!%p1380_p6), [#allocation2], %s731_s14 }
  0x77   : > { %1047 = dma.done.wait (%p1381_p2), %s289_s21, 128  }
  0x78   : > { %1049 = vsyncadd (%p1381_p2), %s289_s21, 4294967168  ;;  %p1382_p1 = scmp.eq.s32.totalorder %s1141_s28, 0 }
  0x7a   : > { %1051 = dma.done.wait (%p1382_p1), [#allocation5], 1152   ;;  %p1383_p11 = pmov %p1382_p1 }
  0x7b   : > { %p1384_p7 = pmov %p1382_p1 }
  0x7c   : > { %1053 = vsyncadd (%p1383_p11), [#allocation5], 4294966144 }
  0x7d   : > { %1055 = dma.done.wait (%p1384_p7), [#allocation8], 1024   ;;  %p1385_p4 = pmov %p1382_p1 }
  0x7e   : > { %v1080_v0 = vmov 0.0   ;;  %vm1081_vm0 = vmmov 0   ;;  %v899_v1 = vld [vmem:[#allocation4] sm:$0xff]   ;;  %v339_v2 = vld [vmem:[%s292_s22] sm:$0xff]  ;;  %vm356_vm1 = vcmask 130048   ;;  %v900_v4 = vld [vmem:[#allocation6] sm:$0xff]  }
  0x7f   : > { %1057 = vsyncadd (%p1385_p4), [#allocation8], 4294966272  ;;  %779 = vmatprep.subr.bf16.mxu0 %v1080_v0  ;;  %781 = vmatprep.mubr.msk.bf16.mxu0 %vm1081_vm0, %v1080_v0  ;;  %v340_v3 = vpack.c.bf16 %v339_v2, %v339_v2  ;;  %v901_v5 = vld [vmem:[#allocation6 + $0x8] sm:$0xff]   ;;  %v902_v6 = vld [vmem:[#allocation6 + $0x10] sm:$0xff]   ;;  %p334_p5 = scmp.lt.s32.totalorder %s1141_s28, 1  ;;  %vm626_vm2 = vcmask 7168  }
  0x80   : > { %785 = vmatprep.subr.bf16.mxu1 %v1080_v0  ;;  %801 = vmatprep.mubr.msk.bf16.mxu1 %vm1081_vm0, %v1080_v0  ;;  %v903_v7 = vld [vmem:[#allocation6 + $0x18] sm:$0xff]   ;;  %v904_v8 = vld [vmem:[#allocation6 + $0x20] sm:$0xff]   ;;  %v905_v9 = vld [vmem:[#allocation6 + $0x28] sm:$0xff]  }
  0x81   : > { %780 = vmatpush3.bf16.msra.mxu0 %v899_v1  ;;  %786 = vmatpush3.bf16.msra.mxu1 %v900_v4  ;;  %v906_v10 = vld [vmem:[#allocation6 + $0x30] sm:$0xff]   ;;  %v907_v11 = vld [vmem:[#allocation6 + $0x38] sm:$0xff]   ;;  %v908_v12 = vld [vmem:[#allocation7] sm:$0xff]   ;;  %s1391_s28 = smov (!%p334_p5, %s1141_s28), 1 }
  0x82   : > { %805 = vmatprep.subr.bf16.mxu0 %v1080_v0  ;;  %787 = vmatprep.subr.bf16.mxu1 %v1080_v0  ;;  %v909_v13 = vld [vmem:[#allocation7 + $0x8] sm:$0xff]   ;;  %v910_v14 = vld [vmem:[#allocation7 + $0x10] sm:$0xff]   ;;  %v911_v15 = vld [vmem:[#allocation7 + $0x18] sm:$0xff]   ;;  %s735_s8 = sshll.u32 %s1391_s28, 3 }
  0x83   : > { %v912_v16 = vld [vmem:[#allocation7 + $0x20] sm:$0xff]   ;;  %v913_v17 = vld [vmem:[#allocation7 + $0x28] sm:$0xff]   ;;  %v914_v26 = vld [vmem:[#allocation7 + $0x30] sm:$0xff]   ;;  %s337_s23 = scalar_lea.vmem %s1371_s7, %s735_s8 }
  0x84   : > { %782 = vmatmul.mubr.msk.bf16.vlgmr.msra.gmra.mrb[0].mxu0 %vm356_vm1, %v340_v3  ;;  %v736_v18 = vld [vmem:[%s1366_s2] ss:$0 sm:$0xff]  ;;  %v915_v27 = vld [vmem:[#allocation7 + $0x38] sm:$0xff]  }
  0x85   : > { %821 = vmatprep.mubr.msk.bf16.mxu0 %vm1081_vm0, %v1080_v0  ;;  %788 = vmatpush3.bf16.msra.mxu1 %v901_v5  ;;  %v739_v28 = vld [vmem:[%s1368_s4] ss:$0 sm:$0xff] }
  0x86   : > { %789 = vmatprep.subr.bf16.mxu1 %v1080_v0  ;;  %806 = vmatpush3.bf16.msra.mxu0 %v908_v12  ;;  %v748_v36 = vld [vmem:[%s1370_s6] ss:$0 sm:$0xff] }
  0x87   : > { %807 = vmatprep.subr.bf16.mxu0 %v1080_v0 }
  0x89   : > { %790 = vmatpush3.bf16.msra.mxu1 %v902_v6 }
  0x8a   : > { %791 = vmatprep.subr.bf16.mxu1 %v1080_v0  ;;  %808 = vmatpush3.bf16.msra.mxu0 %v909_v13 }
  0x8b   : > { %809 = vmatprep.subr.bf16.mxu0 %v1080_v0 }
  0x8d   : > { %792 = vmatpush3.bf16.msra.mxu1 %v903_v7 }
  0x8e   : > { %793 = vmatprep.subr.bf16.mxu1 %v1080_v0  ;;  %810 = vmatpush3.bf16.msra.mxu0 %v910_v14 }
  0x8f   : > { %811 = vmatprep.subr.bf16.mxu0 %v1080_v0 }
  0x91   : > { %794 = vmatpush3.bf16.msra.mxu1 %v904_v8 }
  0x92   : > { %795 = vmatprep.subr.bf16.mxu1 %v1080_v0  ;;  %812 = vmatpush3.bf16.msra.mxu0 %v911_v15 }
  0x93   : > { %813 = vmatprep.subr.bf16.mxu0 %v1080_v0 }
  0x95   : > { %796 = vmatpush3.bf16.msra.mxu1 %v905_v9 }
  0x96   : > { %797 = vmatprep.subr.bf16.mxu1 %v1080_v0  ;;  %814 = vmatpush3.bf16.msra.mxu0 %v912_v16 }
  0x97   : > { %815 = vmatprep.subr.bf16.mxu0 %v1080_v0 }
  0x99   : > { %798 = vmatpush3.bf16.msra.mxu1 %v906_v10 }
  0x9a   : > { %799 = vmatprep.subr.bf16.mxu1 %v1080_v0  ;;  %816 = vmatpush3.bf16.msra.mxu0 %v913_v17 }
  0x9b   : > { %817 = vmatprep.subr.bf16.mxu0 %v1080_v0 }
  0x9d   : > { %800 = vmatpush3.bf16.msra.mxu1 %v907_v11 }
  0x9e   : > { %818 = vmatpush3.bf16.msra.mxu0 %v914_v26 }
  0x9f   : > { %819 = vmatprep.subr.bf16.mxu0 %v1080_v0 }
  0xa2   : > { %820 = vmatpush3.bf16.msra.mxu0 %v915_v27 }
 0x157   : > { %v394_v19 = vpop.f32.mrb[0].mxu0 }
 0x158   : > { %v395_v20 = vadd.f32 %v736_v18, %v394_v19  ;;  %v783_v21 = vpop.f32.mrb[1].mxu0 }
 0x159   : > { %v397_v22 = vpop.f32.mrb[2].mxu0 }
 0x15a   : > { %v400_v23 = vmax.f32 %v395_v20, 0.0  ;;  %v784_v24 = vpop.f32.mrb[3].mxu0 }
 0x15c   : > { %v401_v25 = vpack.c.bf16 %v400_v23, %v400_v23 }
 0x15e   : > { %802 = vmatmul.mubr.bf16.vlgmr.msra.gmra.mrb[0].mxu1 %v401_v25 }
 0x231   : > { %v507_v29 = vpop.f32.mrb[0].mxu1 }
 0x232   : > { %v508_v30 = vadd.f32 %v739_v28, %v507_v29  ;;  %v803_v31 = vpop.f32.mrb[1].mxu1 }
 0x233   : > { %v510_v32 = vpop.f32.mrb[2].mxu1 }
 0x234   : > { %v513_v33 = vmax.f32 %v508_v30, 0.0  ;;  %v804_v34 = vpop.f32.mrb[3].mxu1 }
 0x236   : > { %v514_v35 = vpack.c.bf16 %v513_v33, %v513_v33 }
 0x238   : > { %822 = vmatmul.mubr.bf16.vlgmr.msra.gmra.mrb[4].mxu0 %v514_v35 }
 0x30b   : > { %v620_v37 = vpop.f32.mrb[4].mxu0 }
 0x30c   : > { %v621_v38 = vadd.f32 %v748_v36, %v620_v37  ;;  %v823_v39 = vpop.f32.mrb[5].mxu0 }
 0x30d   : > { %v623_v40 = vpop.f32.mrb[6].mxu0 }
 0x30e   : > { %627 = vst.msk [vmem:[%s337_s23] sm:$0xff] %vm626_vm2, %v621_v38  ;;  %v824_v41 = vpop.f32.mrb[7].mxu0 }
 0x30f PF: > { %p19_p9 = scmp.ge.s32.totalorder %s1252_s20, 4   ;;  %s1386_s24 = smov %s1064_s25 }
 0x310   : > { %s1387_s25 = smov %s1068_s26  ;;  %s1388_s26 = smov %s1262_s11 }
 0x311   : > { %s1389_s27 = smov %s1252_s20  ;;  %21 = sbr.rel (!%p19_p9) target bundleno = 5 (0x5), region = 100 }
 0x318   :  { %647 = vsyncpa [#allocation3], 1 }
 0x319   :  { %649 = vsyncpa [#allocation3 + $0x1], 1 }
 0x31a   :  { %650 = vsyncpa [#allocation5], 1 }
 0x31b   :  { %651 = vsyncpa [#allocation8], 1 }

</bundles_post_ra>
